<compile_context>
chip_gen: v6e
topology: v6e:2x2x1
jax: 0.10.0
libtpu: 0.0.40
codegen_flags: <defaults>
</compile_context>

<pallas_src>
import functools

import jax
import jax.numpy as jnp
from jax import lax
from jax.experimental import pallas as pl
from jax.experimental.pallas import tpu as pltpu

KH = KW = 3  # kernel_size=3, stride=1, padding=1 -> "same" spatial dims


def _conv_block_kernel(x_ref, w_ref, b_ref, o_ref, rhs_ref, *, H, W, compute_dtype):
    # x_ref:   (NB, Cin, H*W)        flat-spatial images, lane axis = H*W (lane-dense)
    # w_ref:   (Cout, KH*KW*Cin)     im2col weight, tap-major / channel-minor
    # b_ref:   (Cout, 1)             f32 bias
    # o_ref:   (NB, Cout, H*W)       flattened NCHW output (lane-dense)
    # rhs_ref: (KH*KW*Cin, H*W) f32  VMEM scratch holding the im2col RHS
    NB, Cin, HW = x_ref.shape

    # ---- image-independent work (hoisted out of the per-image loop) ----------
    # Flat output position -> (h, w); used to zero out-of-bounds taps (== zero padding).
    pos = lax.broadcasted_iota(jnp.int32, (1, HW), 1)
    if (W & (W - 1)) == 0:                     # power of two: shifts/ands only
        h_idx = pos >> (W.bit_length() - 1)
        w_idx = pos & (W - 1)
    else:
        h_idx = pos // W
        w_idx = pos % W

    taps_meta = []                             # (flat lane shift, boundary mask | None)
    for kh in range(KH):
        for kw in range(KW):
            d = (kh - 1) * W + (kw - 1)        # flat input offset of this tap
            conds = []
            if kh == 0:
                conds.append(h_idx >= 1)
            if kh == KH - 1:
                conds.append(h_idx < H - 1)
            if kw == 0:
                conds.append(w_idx >= 1)
            if kw == KW - 1:
                conds.append(w_idx < W - 1)
            mask = functools.reduce(jnp.logical_and, conds) if conds else None
            taps_meta.append((d, mask))

    w_mx = w_ref[...].astype(compute_dtype)    # (Cout, KH*KW*Cin)  MXU LHS
    b = b_ref[...]                             # (Cout, 1) f32

    # ---- per image: build im2col RHS with XLU rolls, then ONE MXU matmul -----
    for nb in range(NB):
        xb = x_ref[nb]                         # (Cin, H*W) f32
        for t_idx, (d, mask) in enumerate(taps_meta):
            tap = xb if d == 0 else pltpu.roll(xb, shift=(-d) % HW, axis=1)
            if mask is not None:
                tap = jnp.where(mask, tap, 0.0)          # zero padding via masking
            # Static-offset sub-tile store (tile-aligned when Cin is a multiple of 8).
            rhs_ref[t_idx * Cin:(t_idx + 1) * Cin, :] = tap

        rhs = rhs_ref[...].astype(compute_dtype)         # (KH*KW*Cin, H*W)
        acc = jnp.dot(w_mx, rhs, preferred_element_type=jnp.float32)  # (Cout, H*W) f32
        acc = jnp.maximum(acc + b, 0.0)                  # bias + ReLU in f32
        # Dropout(p=0.2) in eval() is the identity.
        o_ref[nb] = acc.astype(o_ref.dtype)


def conv_block_forward(x_nchw, weight, bias, *, compute_dtype=jnp.bfloat16,
                       images_per_step=None):
    """ConvBlock forward. x: (N,Cin,H,W); weight: (Cout,Cin,KH,KW); bias: (Cout,)."""
    N, Cin, H, W = x_nchw.shape
    Cout = weight.shape[0]
    HW = H * W
    K9 = KH * KW * Cin

    # >=2 grid steps keeps both v7x TensorCores busy; >1 image per step amortizes the
    # ~0.35us per-grid-step overhead once the batch is large enough.
    if images_per_step is None:
        images_per_step = N // 2 if (N >= 4 and N % 2 == 0) else 1
    nb = images_per_step
    assert N % nb == 0, "images_per_step must divide the batch size"

    # Free reshapes only -- no pad / transpose HBM passes on the activation path.
    x_flat = x_nchw.reshape(N, Cin, HW)

    # One-time tiny weight transform: (Cout,Cin,KH,KW) -> (Cout, KH*KW*Cin),
    # tap-major / channel-minor to match the RHS rows built inside the kernel.
    w_mat = (jnp.transpose(weight, (0, 2, 3, 1))
             .reshape(Cout, K9)
             .astype(compute_dtype))
    b2 = bias.reshape(Cout, 1).astype(jnp.float32)

    kernel = functools.partial(_conv_block_kernel, H=H, W=W,
                               compute_dtype=compute_dtype)

    out_flat = pl.pallas_call(
        kernel,
        out_shape=jax.ShapeDtypeStruct((N, Cout, HW), x_nchw.dtype),
        grid_spec=pltpu.PrefetchScalarGridSpec(
            num_scalar_prefetch=0,
            grid=(N // nb,),
            in_specs=[
                pl.BlockSpec((nb, Cin, HW), lambda i: (i, 0, 0)),
                pl.BlockSpec((Cout, K9), lambda i: (0, 0)),
                pl.BlockSpec((Cout, 1), lambda i: (0, 0)),
            ],
            out_specs=pl.BlockSpec((nb, Cout, HW), lambda i: (i, 0, 0)),
            scratch_shapes=[pltpu.VMEM((K9, HW), jnp.float32)],
        ),
        compiler_params=pltpu.CompilerParams(
            dimension_semantics=("parallel",),
            vmem_limit_bytes=32 * 1024 * 1024,
        ),
    )(x_flat, w_mat, b2)

    return out_flat.reshape(N, Cout, H, W)   # free reshape back to NCHW


def reference_forward(x_nchw, weight, bias, *, compute_dtype=jnp.bfloat16):
    """Pure-JAX reference using the same operand quantization (f32 accumulation)."""
    y = lax.conv_general_dilated(
        x_nchw.astype(compute_dtype), weight.astype(compute_dtype),
        window_strides=(1, 1), padding=((1, 1), (1, 1)),
        dimension_numbers=("NCHW", "OIHW", "NCHW"),
        preferred_element_type=jnp.float32)
    y = y + bias.reshape(1, -1, 1, 1).astype(jnp.float32)
    return jnp.maximum(y, 0.0).astype(x_nchw.dtype)


if __name__ == "__main__":
    key = jax.random.PRNGKey(0)
    k_x, k_w, k_b = jax.random.split(key, 3)

    N, Cin, H, W = 2, 4, 16, 16
    Cout = 8

    x = jax.random.normal(k_x, (N, Cin, H, W), dtype=jnp.float32)
    # Deterministic synthetic parameters (shapes from nn.Conv2d(Cin, Cout, 3)).
    fan_in = Cin * KH * KW
    bound = 1.0 / (fan_in ** 0.5)
    weight = jax.random.uniform(k_w, (Cout, Cin, KH, KW), jnp.float32, -bound, bound)
    bias = jax.random.uniform(k_b, (Cout,), jnp.float32, -bound, bound)

    out = jax.block_until_ready(conv_block_forward(x, weight, bias))
    ref = reference_forward(x, weight, bias)

    assert out.shape == (N, Cout, H, W)
    # Kernel and reference use identical bf16 operands with f32 accumulation, so they
    # agree to ~1e-6; tolerance leaves slack for backend conv implementation details.
    assert jnp.allclose(out, ref, atol=5e-3, rtol=5e-3), "mismatch vs reference"

    print("KERNEL_OK")
</pallas_src>

<mosaic_0001>
module attributes {stable_mosaic.version = 11 : i64} {
  func.func @_conv_block_kernel(%arg0: i32, %arg1: memref<1x4x256xf32, #tpu.memory_space<vmem>>, %arg2: memref<8x36xbf16, #tpu.memory_space<vmem>>, %arg3: memref<8x1xf32, #tpu.memory_space<vmem>>, %arg4: memref<1x8x256xf32, #tpu.memory_space<vmem>>, %arg5: memref<36x256xf32, #tpu.memory_space<vmem>>) attributes {dimension_semantics = [#tpu.dimension_semantics<parallel>], iteration_bounds = array<i64: 2>, scalar_prefetch = 0 : i64, scratch_operands = 1 : i64, tpu.core_type = #tpu.core_type<tc>, window_params = [{transform_indices = @transform_0, window_bounds = array<i64: 1, 4, 256>}, {pipeline_mode = #tpu.pipeline_mode<synchronous>, transform_indices = @transform_1, window_bounds = array<i64: 8, 36>}, {pipeline_mode = #tpu.pipeline_mode<synchronous>, transform_indices = @transform_2, window_bounds = array<i64: 8, 1>}, {transform_indices = @transform_3, window_bounds = array<i64: 1, 8, 256>}]} {
    %0 = tpu.iota {dimensions = array<i32: 1>} : vector<1x256xi32>
    %c4_i32 = arith.constant 4 : i32
    %1 = vector.broadcast %c4_i32 : i32 to vector<1x256xi32>
    %2 = arith.shrsi %0, %1 : vector<1x256xi32>
    %c15_i32 = arith.constant 15 : i32
    %3 = vector.broadcast %c15_i32 : i32 to vector<1x256xi32>
    %4 = arith.andi %0, %3 : vector<1x256xi32>
    %c1_i32 = arith.constant 1 : i32
    %5 = vector.broadcast %c1_i32 : i32 to vector<1x256xi32>
    %6 = arith.cmpi sge, %2, %5 : vector<1x256xi32>
    %c1_i32_0 = arith.constant 1 : i32
    %7 = vector.broadcast %c1_i32_0 : i32 to vector<1x256xi32>
    %8 = arith.cmpi sge, %4, %7 : vector<1x256xi32>
    %9 = arith.andi %6, %8 : vector<1x256xi1>
    %c1_i32_1 = arith.constant 1 : i32
    %10 = vector.broadcast %c1_i32_1 : i32 to vector<1x256xi32>
    %11 = arith.cmpi sge, %2, %10 : vector<1x256xi32>
    %c1_i32_2 = arith.constant 1 : i32
    %12 = vector.broadcast %c1_i32_2 : i32 to vector<1x256xi32>
    %13 = arith.cmpi sge, %2, %12 : vector<1x256xi32>
    %c15_i32_3 = arith.constant 15 : i32
    %14 = vector.broadcast %c15_i32_3 : i32 to vector<1x256xi32>
    %15 = arith.cmpi slt, %4, %14 : vector<1x256xi32>
    %16 = arith.andi %13, %15 : vector<1x256xi1>
    %c1_i32_4 = arith.constant 1 : i32
    %17 = vector.broadcast %c1_i32_4 : i32 to vector<1x256xi32>
    %18 = arith.cmpi sge, %4, %17 : vector<1x256xi32>
    %c15_i32_5 = arith.constant 15 : i32
    %19 = vector.broadcast %c15_i32_5 : i32 to vector<1x256xi32>
    %20 = arith.cmpi slt, %4, %19 : vector<1x256xi32>
    %c15_i32_6 = arith.constant 15 : i32
    %21 = vector.broadcast %c15_i32_6 : i32 to vector<1x256xi32>
    %22 = arith.cmpi slt, %2, %21 : vector<1x256xi32>
    %c1_i32_7 = arith.constant 1 : i32
    %23 = vector.broadcast %c1_i32_7 : i32 to vector<1x256xi32>
    %24 = arith.cmpi sge, %4, %23 : vector<1x256xi32>
    %25 = arith.andi %22, %24 : vector<1x256xi1>
    %c15_i32_8 = arith.constant 15 : i32
    %26 = vector.broadcast %c15_i32_8 : i32 to vector<1x256xi32>
    %27 = arith.cmpi slt, %2, %26 : vector<1x256xi32>
    %c15_i32_9 = arith.constant 15 : i32
    %28 = vector.broadcast %c15_i32_9 : i32 to vector<1x256xi32>
    %29 = arith.cmpi slt, %2, %28 : vector<1x256xi32>
    %c15_i32_10 = arith.constant 15 : i32
    %30 = vector.broadcast %c15_i32_10 : i32 to vector<1x256xi32>
    %31 = arith.cmpi slt, %4, %30 : vector<1x256xi32>
    %32 = arith.andi %29, %31 : vector<1x256xi1>
    %c0 = arith.constant 0 : index
    %c0_11 = arith.constant 0 : index
    %33 = vector.load %arg2[%c0, %c0_11] : memref<8x36xbf16, #tpu.memory_space<vmem>>, vector<8x36xbf16>
    %c0_12 = arith.constant 0 : index
    %c0_13 = arith.constant 0 : index
    %34 = vector.load %arg3[%c0_12, %c0_13] : memref<8x1xf32, #tpu.memory_space<vmem>>, vector<8x1xf32>
    %c0_14 = arith.constant 0 : index
    %c0_15 = arith.constant 0 : index
    %c0_16 = arith.constant 0 : index
    %35 = vector.load %arg1[%c0_14, %c0_15, %c0_16] : memref<1x4x256xf32, #tpu.memory_space<vmem>>, vector<1x4x256xf32>
    %36 = vector.shape_cast %35 : vector<1x4x256xf32> to vector<4x256xf32>
    %c17_i32 = arith.constant 17 : i32
    %37 = tpu.dynamic_rotate %36 by %c17_i32 dim 1 : vector<4x256xf32>, i32 -> vector<4x256xf32>
    %cst = arith.constant 0.000000e+00 : f32
    %38 = vector.shape_cast %9 : vector<1x256xi1> to vector<1x256xi1>
    %39 = vector.broadcast %38 : vector<1x256xi1> to vector<4x256xi1>
    %40 = vector.broadcast %cst : f32 to vector<4x256xf32>
    %41 = arith.select %39, %37, %40 : vector<4x256xi1>, vector<4x256xf32>
    %c0_17 = arith.constant 0 : index
    %c0_18 = arith.constant 0 : index
    %42 = vector.load %arg5[%c0_17, %c0_18] : memref<36x256xf32, #tpu.memory_space<vmem>>, vector<4x256xf32>
    tpu.vector_store %arg5[%c0_17, %c0_18], %41 {strides = array<i32>} : memref<36x256xf32, #tpu.memory_space<vmem>>, vector<4x256xf32>,
    %c16_i32 = arith.constant 16 : i32
    %43 = tpu.dynamic_rotate %36 by %c16_i32 dim 1 : vector<4x256xf32>, i32 -> vector<4x256xf32>
    %cst_19 = arith.constant 0.000000e+00 : f32
    %44 = vector.shape_cast %11 : vector<1x256xi1> to vector<1x256xi1>
    %45 = vector.broadcast %44 : vector<1x256xi1> to vector<4x256xi1>
    %46 = vector.broadcast %cst_19 : f32 to vector<4x256xf32>
    %47 = arith.select %45, %43, %46 : vector<4x256xi1>, vector<4x256xf32>
    %c4 = arith.constant 4 : index
    %c0_20 = arith.constant 0 : index
    %48 = vector.load %arg5[%c4, %c0_20] : memref<36x256xf32, #tpu.memory_space<vmem>>, vector<4x256xf32>
    tpu.vector_store %arg5[%c4, %c0_20], %47 {strides = array<i32>} : memref<36x256xf32, #tpu.memory_space<vmem>>, vector<4x256xf32>,
    %c15_i32_21 = arith.constant 15 : i32
    %49 = tpu.dynamic_rotate %36 by %c15_i32_21 dim 1 : vector<4x256xf32>, i32 -> vector<4x256xf32>
    %cst_22 = arith.constant 0.000000e+00 : f32
    %50 = vector.shape_cast %16 : vector<1x256xi1> to vector<1x256xi1>
    %51 = vector.broadcast %50 : vector<1x256xi1> to vector<4x256xi1>
    %52 = vector.broadcast %cst_22 : f32 to vector<4x256xf32>
    %53 = arith.select %51, %49, %52 : vector<4x256xi1>, vector<4x256xf32>
    %c8 = arith.constant 8 : index
    %c0_23 = arith.constant 0 : index
    %54 = vector.load %arg5[%c8, %c0_23] : memref<36x256xf32, #tpu.memory_space<vmem>>, vector<4x256xf32>
    tpu.vector_store %arg5[%c8, %c0_23], %53 {strides = array<i32>} : memref<36x256xf32, #tpu.memory_space<vmem>>, vector<4x256xf32>,
    %c1_i32_24 = arith.constant 1 : i32
    %55 = tpu.dynamic_rotate %36 by %c1_i32_24 dim 1 : vector<4x256xf32>, i32 -> vector<4x256xf32>
    %cst_25 = arith.constant 0.000000e+00 : f32
    %56 = vector.shape_cast %18 : vector<1x256xi1> to vector<1x256xi1>
    %57 = vector.broadcast %56 : vector<1x256xi1> to vector<4x256xi1>
    %58 = vector.broadcast %cst_25 : f32 to vector<4x256xf32>
    %59 = arith.select %57, %55, %58 : vector<4x256xi1>, vector<4x256xf32>
    %c12 = arith.constant 12 : index
    %c0_26 = arith.constant 0 : index
    %60 = vector.load %arg5[%c12, %c0_26] : memref<36x256xf32, #tpu.memory_space<vmem>>, vector<4x256xf32>
    tpu.vector_store %arg5[%c12, %c0_26], %59 {strides = array<i32>} : memref<36x256xf32, #tpu.memory_space<vmem>>, vector<4x256xf32>,
    %c16 = arith.constant 16 : index
    %c0_27 = arith.constant 0 : index
    %61 = vector.load %arg5[%c16, %c0_27] : memref<36x256xf32, #tpu.memory_space<vmem>>, vector<4x256xf32>
    tpu.vector_store %arg5[%c16, %c0_27], %36 {strides = array<i32>} : memref<36x256xf32, #tpu.memory_space<vmem>>, vector<4x256xf32>,
    %c255_i32 = arith.constant 255 : i32
    %62 = tpu.dynamic_rotate %36 by %c255_i32 dim 1 : vector<4x256xf32>, i32 -> vector<4x256xf32>
    %cst_28 = arith.constant 0.000000e+00 : f32
    %63 = vector.shape_cast %20 : vector<1x256xi1> to vector<1x256xi1>
    %64 = vector.broadcast %63 : vector<1x256xi1> to vector<4x256xi1>
    %65 = vector.broadcast %cst_28 : f32 to vector<4x256xf32>
    %66 = arith.select %64, %62, %65 : vector<4x256xi1>, vector<4x256xf32>
    %c20 = arith.constant 20 : index
    %c0_29 = arith.constant 0 : index
    %67 = vector.load %arg5[%c20, %c0_29] : memref<36x256xf32, #tpu.memory_space<vmem>>, vector<4x256xf32>
    tpu.vector_store %arg5[%c20, %c0_29], %66 {strides = array<i32>} : memref<36x256xf32, #tpu.memory_space<vmem>>, vector<4x256xf32>,
    %c241_i32 = arith.constant 241 : i32
    %68 = tpu.dynamic_rotate %36 by %c241_i32 dim 1 : vector<4x256xf32>, i32 -> vector<4x256xf32>
    %cst_30 = arith.constant 0.000000e+00 : f32
    %69 = vector.shape_cast %25 : vector<1x256xi1> to vector<1x256xi1>
    %70 = vector.broadcast %69 : vector<1x256xi1> to vector<4x256xi1>
    %71 = vector.broadcast %cst_30 : f32 to vector<4x256xf32>
    %72 = arith.select %70, %68, %71 : vector<4x256xi1>, vector<4x256xf32>
    %c24 = arith.constant 24 : index
    %c0_31 = arith.constant 0 : index
    %73 = vector.load %arg5[%c24, %c0_31] : memref<36x256xf32, #tpu.memory_space<vmem>>, vector<4x256xf32>
    tpu.vector_store %arg5[%c24, %c0_31], %72 {strides = array<i32>} : memref<36x256xf32, #tpu.memory_space<vmem>>, vector<4x256xf32>,
    %c240_i32 = arith.constant 240 : i32
    %74 = tpu.dynamic_rotate %36 by %c240_i32 dim 1 : vector<4x256xf32>, i32 -> vector<4x256xf32>
    %cst_32 = arith.constant 0.000000e+00 : f32
    %75 = vector.shape_cast %27 : vector<1x256xi1> to vector<1x256xi1>
    %76 = vector.broadcast %75 : vector<1x256xi1> to vector<4x256xi1>
    %77 = vector.broadcast %cst_32 : f32 to vector<4x256xf32>
    %78 = arith.select %76, %74, %77 : vector<4x256xi1>, vector<4x256xf32>
    %c28 = arith.constant 28 : index
    %c0_33 = arith.constant 0 : index
    %79 = vector.load %arg5[%c28, %c0_33] : memref<36x256xf32, #tpu.memory_space<vmem>>, vector<4x256xf32>
    tpu.vector_store %arg5[%c28, %c0_33], %78 {strides = array<i32>} : memref<36x256xf32, #tpu.memory_space<vmem>>, vector<4x256xf32>,
    %c239_i32 = arith.constant 239 : i32
    %80 = tpu.dynamic_rotate %36 by %c239_i32 dim 1 : vector<4x256xf32>, i32 -> vector<4x256xf32>
    %cst_34 = arith.constant 0.000000e+00 : f32
    %81 = vector.shape_cast %32 : vector<1x256xi1> to vector<1x256xi1>
    %82 = vector.broadcast %81 : vector<1x256xi1> to vector<4x256xi1>
    %83 = vector.broadcast %cst_34 : f32 to vector<4x256xf32>
    %84 = arith.select %82, %80, %83 : vector<4x256xi1>, vector<4x256xf32>
    %c32 = arith.constant 32 : index
    %c0_35 = arith.constant 0 : index
    %85 = vector.load %arg5[%c32, %c0_35] : memref<36x256xf32, #tpu.memory_space<vmem>>, vector<4x256xf32>
    tpu.vector_store %arg5[%c32, %c0_35], %84 {strides = array<i32>} : memref<36x256xf32, #tpu.memory_space<vmem>>, vector<4x256xf32>,
    %c0_36 = arith.constant 0 : index
    %c0_37 = arith.constant 0 : index
    %86 = vector.load %arg5[%c0_36, %c0_37] : memref<36x256xf32, #tpu.memory_space<vmem>>, vector<36x256xf32>
    %87 = arith.truncf %86 : vector<36x256xf32> to vector<36x256xbf16>
    %cst_38 = arith.constant dense<0.000000e+00> : vector<8x256xf32>
    %88 = tpu.matmul %33, %87, %cst_38 {dimension_numbers = #tpu.dot_dimension_numbers<[1], [0], [0], [1], [0, 0, 1, 1], [], []>} : vector<8x36xbf16>, vector<36x256xbf16>, vector<8x256xf32> -> vector<8x256xf32>
    %89 = vector.broadcast %34 : vector<8x1xf32> to vector<8x256xf32>
    %90 = arith.addf %88, %89 : vector<8x256xf32>
    %cst_39 = arith.constant 0.000000e+00 : f32
    %91 = vector.broadcast %cst_39 : f32 to vector<8x256xf32>
    %92 = arith.maximumf %90, %91 : vector<8x256xf32>
    %c0_40 = arith.constant 0 : index
    %c0_41 = arith.constant 0 : index
    %c0_42 = arith.constant 0 : index
    %93 = vector.load %arg4[%c0_40, %c0_41, %c0_42] : memref<1x8x256xf32, #tpu.memory_space<vmem>>, vector<1x8x256xf32>
    %94 = vector.shape_cast %93 : vector<1x8x256xf32> to vector<8x256xf32>
    %95 = vector.shape_cast %92 : vector<8x256xf32> to vector<1x8x256xf32>
    tpu.vector_store %arg4[%c0_40, %c0_41, %c0_42], %95 {strides = array<i32>} : memref<1x8x256xf32, #tpu.memory_space<vmem>>, vector<1x8x256xf32>,
    return
  }
  func.func @transform_0(%arg0: i32) -> (i32, i32, i32) {
    %c0_i32 = arith.constant 0 : i32
    %c0_i32_0 = arith.constant 0 : i32
    %c0_i32_1 = arith.constant 0 : i32
    return %arg0, %c0_i32, %c0_i32_0 : i32, i32, i32
  }
  func.func @transform_1(%arg0: i32) -> (i32, i32) {
    %c0_i32 = arith.constant 0 : i32
    %c0_i32_0 = arith.constant 0 : i32
    %c0_i32_1 = arith.constant 0 : i32
    return %c0_i32, %c0_i32_0 : i32, i32
  }
  func.func @transform_2(%arg0: i32) -> (i32, i32) {
    %c0_i32 = arith.constant 0 : i32
    %c0_i32_0 = arith.constant 0 : i32
    %c0_i32_1 = arith.constant 0 : i32
    return %c0_i32, %c0_i32_0 : i32, i32
  }
  func.func @transform_3(%arg0: i32) -> (i32, i32, i32) {
    %c0_i32 = arith.constant 0 : i32
    %c0_i32_0 = arith.constant 0 : i32
    %c0_i32_1 = arith.constant 0 : i32
    return %arg0, %c0_i32, %c0_i32_0 : i32, i32, i32
  }
}

</mosaic_0001>

<bundles_post_ra>
// kernel: tpu_custom_call.1
= control target key start
LH: loop header
LB: loop body
LE: loop exit
PB: predicated region body
PF: predicated region fallthrough
CT: control target
= control target key end

     0   :  { %8 = vsyncpa [#allocation4], 0  ;;  %s988_s0 = inlined_call_operand.hbm [shape: f32[2,4,256], index: 0, kind: input, shape index: {}]   ;;  %s989_s1 = inlined_call_operand.vmem [shape: bf16[8,36], index: 1, kind: input, shape index: {}]   ;;  %s990_s2 = inlined_call_operand.vmem [shape: f32[8,1], index: 2, kind: input, shape index: {}]   ;;  %s991_s3 = inlined_call_operand.hbm [shape: f32[2,8,256], index: 3, kind: output, shape index: {}]  }
   0x1   :  { %10 = vsyncpa [#allocation4 + $0x1], 0 }
   0x2   :  { %11 = vsyncpa [#allocation5], 0 }
   0x3   :  { %13 = vsyncpa [#allocation5 + $0x1], 0  ;;  %s725_s12 = smov 0   ;;  %s727_s13 = smov 0  }
   0x4   :  { %s729_s14 = smov 0   ;;  %s731_s15 = smov 0  }
   0x5 LB: > { %s746_s16 = sadd.s32 4294967295, %s692_s15   ;;  %s525_s17 = sadd.s32 4294967294, %s692_s15   ;;  %s692_s15 = sphi %s731_s15, %s1024_s15   ;;  %s688_s14 = sphi %s729_s14, %s1023_s14   ;;  %s684_s13 = sphi %s727_s13, %s1022_s13   ;;  %s680_s12 = sphi %s725_s12, %s1021_s12  }
   0x6   : > { %s750_s18 = sadd.s32 1, %s692_s15   ;;  %s26_s19 = sadd.s32 1, %s688_s14 }
   0x7   : > { %s23_s20 = ssub.s32 %s692_s15, %s750_s18  ;;  %p33_p0 = scmp.ne.s32.totalorder %s688_s14, %s684_s13 }
   0x8   : > { %p24_p1 = scmp.eq.s32.totalorder %s23_s20, 0  ;;  %p34_p2 = scmp.eq.s32.totalorder %s692_s15, 0 }
   0x9   : > { %p39_p3 = scmp.ne.s32.totalorder %s684_s13, %s680_s12  ;;  %p40_p4 = scmp.eq.s32.totalorder %s746_s16, 0 }
   0xa   : > { %s762_s21 = scalar_select %p24_p1, %s688_s14, %s26_s19  }
   0xb   : > { %p764_p5 = por %p34_p2, %p33_p0  ;;  %p768_p6 = por %p40_p4, %p39_p3 }
   0xc   : > { %p105_p7 = scmp.eq.s32.totalorder %s746_s16, 1  ;;  %p111_p8 = scmp.eq.s32.totalorder %s525_s17, 1 }
   0xd   : > { %s995_s23 = scalar_select %p768_p6, 1, 0 }
   0xe   : > { %p555_p10 = scmp.lt.s32.totalorder %s692_s15, 2  ;;  %p775_p11 = por %p105_p7, %p33_p0 }
   0xf   : > { %p779_p12 = por %p111_p8, %p39_p3  ;;  %s137_s26 = sand.u32 1, %s688_s14  }
  0x10   : > { %s996_s24 = scalar_select %p775_p11, 1, 0 }
  0x11   : > { %s997_s25 = scalar_select %p779_p12, 1, 0 }
  0x12   : > { %s541_s27 = sshll.u32 %s692_s15, 7  ;;  %s528_s28 = sshll.u32 %s137_s26, 3 }
  0x13   : > { %s788_s4 = scalar_lea.hbm %s988_s0, %s541_s27  ;;  %s141_s5 = scalar_lea.vmem [#allocation3], %s528_s28 }
  0x14   : > { %s149_s6 = sshll.u32 %s141_s5, 4  ;;  %p792_p13 = pnand %p555_p10, %p764_p5  ;;  %s796_s6 = int_to_ptr.vmem [resolvable:$true] %s149_s6 }
  0x15   : > { %s138_s8 = scalar_lea.sflag [#allocation4], %s137_s26  ;;  %s600_s9 = scalar_lea.hbm %s788_s4, 128 }
  0x16   : > { %p601_p2 = scmp.ne.s32.totalorder %s788_s4, %s600_s9  ;;  %p602_p3 = pneg %p792_p13 }
  0x17   : > { %s605_s17 = scalar_lea.hbm %s988_s0, 256  ;;  %p606_p5 = scmp.lt.s32.totalorder %s788_s4, %s988_s0 }
  0x18   : > { %p603_p4 = pnand %p602_p3, %p601_p2  ;;  %p607_p8 = scmp.lt.s32.totalorder %s605_s17, %s600_s9 }
  0x1a   : > { %p604_p7 = pneg %p603_p4  ;;  %p608_p10 = por %p607_p8, %p606_p5 }
  0x1c   : > { %p609_p9 = pnand %p608_p10, %p604_p7 }
  0x1e   : > { %612 = shalt.err (!%p609_p9)
}
  0x1f   : > { %s613_s22 = scalar_lea.vmem %s796_s6, 128  ;;  %s694_s26 = smov [#allocation3]  }
  0x20   : > { %p614_p0 = scmp.ne.s32.totalorder %s796_s6, %s613_s22  ;;  %s618_s27 = sshll.u32 %s694_s26, 4  ;;  %s619_s27 = int_to_ptr.vmem [resolvable:$false] %s618_s27 }
  0x21   : > { %s620_s28 = scalar_lea.vmem %s619_s27, 256  ;;  %p621_p4 = scmp.lt.s32.totalorder %s796_s6, %s619_s27 }
  0x22   : > { %p616_p1 = pnand %p614_p0, %p602_p3  ;;  %p622_p12 = scmp.lt.s32.totalorder %s620_s28, %s613_s22 }
  0x24   : > { %p617_p2 = pneg %p616_p1  ;;  %p623_p11 = por %p622_p12, %p621_p4 }
  0x26   : > { %p624_p6 = pnand %p623_p11, %p617_p2 }
  0x28   : > { %627 = shalt.err (!%p624_p6)
}
  0x29   : > { %550 = dma.hbm_to_vmem [thread:$0]  (!%p792_p13), %s788_s4, 128, %s796_s6, %s138_s8  }
  0x2a   : > { %p999_p9 = scmp.lt.s32.totalorder %s692_s15, 3  ;;  %p1000_p7 = scmp.ge.s32.totalorder %s692_s15, 1 }
  0x2c   : > { %p155_p0 = pnand %p1000_p7, %p999_p9 }
  0x2d   : > { %s823_s29 = sand.u32 (!%p155_p0), 1, %s684_s13   ;;  %p1001_p6 = scmp.ne.s32.totalorder (!%p155_p0), %s995_s23, 0 }
  0x2e   : > { %158 = sbr.rel (%p155_p0) target bundleno = 424 (0x1a8), region = 32  ;;  %s532_s30 = sshll.u32 (!%p155_p0), %s823_s29, 3 }
  0x2f   : > { %s161_s5 = scalar_lea.sflag (!%p155_p0), [#allocation4], %s823_s29  ;;  %s164_s9 = scalar_lea.vmem (!%p155_p0), [#allocation3], %s532_s30 }
  0x33   : > { %671 = dma.done.wait (%p1001_p6), %s161_s5, 128  }
  0x34   : > { %673 = vsyncadd (%p1001_p6), %s161_s5, 4294967168  ;;  %v213_v0 = vld [vmem:[%s164_s9] sm:$0xff]  ;;  %s695_s4 = smov 127   ;;  %s696_s6 = smov 111   ;;  %v703_v2 = vmov 0   ;;  %v212_v3 = vld [vmem:[%s990_s2] sm:$0xff]  ;;  %v188_v4 = vlaneseq }
  0x35   : > { %291 = vrot.lane.b32.xlu1 %v213_v0, %s695_s4  ;;  %289 = vst [vmem:[#allocation2 + $0x48] sm:$0xf] %v213_v0  ;;  %348 = vrot.lane.b32.xlu0 %v213_v0, %s696_s6  ;;  %v215_v1 = vcombine.high %v213_v0, %v213_v0  ;;  %s697_s7 = smov 112   ;;  %s698_s8 = smov 113   ;;  %v211_v14 = vld [vmem:[%s989_s1] sm:$0xf] }
  0x36   : > { %s699_s10 = smov 16   ;;  %s700_s23 = smov 1   ;;  %427 = vmatprep.mubr.bf16.mxu0 %v703_v2  ;;  %598 = vset.pattern.permute.xlu0 %v703_v2  ;;  %v834_v5 = vand.u32 127, %v188_v4 }
  0x37   : > { %290 = vst [vmem:[#allocation2 + $0x28] sm:$0xf] %v215_v1  ;;  %s701_s11 = smov 17   ;;  %s702_s17 = smov 15  }
  0x38   : > { %v190_v6 = vadd.s32 128, %v834_v5  ;;  %v193_v7 = vand.u32 15, %v834_v5  ;;  %v191_v9 = vshra.s32 %v834_v5, 4  ;;  %vm295_vm0 = vcmp.lt.s32.totalorder %v834_v5, 127  ;;  %s533_s27 = sshll.u32 %s823_s29, 4  ;;  %s542_s28 = sshll.u32 %s746_s16, 8 }
  0x39   : > { %327 = vrot.lane.b32.xlu0 %v213_v0, %s697_s7  ;;  %293 = vrot.lane.b32.xlu1 %v215_v1, %s695_s4  ;;  %vm331_vm5 = vcmp.lt.s32.totalorder %v834_v5, 112  ;;  %vm352_vm7 = vcmp.lt.s32.totalorder %v834_v5, 111  ;;  %vm316_vm11 = vcmp.lt.s32.totalorder %v834_v5, 113  ;;  %vm236_vm14 = vcmp.lt.s32.totalorder %v834_v5, 16  ;;  %s186_s30 = scalar_lea.vmem [#allocation6], %s533_s27  ;;  %p1018_p12 = scmp.ne.s32.totalorder %s996_s24, 0 }
  0x3a   : > { %v194_v8 = vand.u32 15, %v190_v6  ;;  %v192_v12 = vshra.s32 %v190_v6, 4  ;;  %vm840_vm1 = vcmp.lt.s32.totalorder %v193_v7, 15  ;;  %vm848_vm3 = vcmp.lt.s32.totalorder %v191_v9, 15  ;;  %s455_s5 = sshll.u32 %s186_s30, 4  ;;  %s704_s16 = smov [#allocation6]   ;;  %s456_s5 = int_to_ptr.vmem [resolvable:$true] %s455_s5 }
  0x3b   : > { %vm209_vm6 = vmand %vm848_vm3, %vm840_vm1  ;;  %vm870_vm9 = vcmp.ge.s32.totalorder %v193_v7, 1  ;;  %vm901_vm15 = vcmp.ge.s32.totalorder %v191_v9, 1 }
  0x3c   : > { %vm844_vm2 = vcmp.lt.s32.totalorder %v194_v8, 15  ;;  %vm852_vm4 = vcmp.lt.s32.totalorder %v192_v12, 15  ;;  %vm874_vm10 = vcmp.ge.s32.totalorder %v194_v8, 1  ;;  %vm207_vm12 = vmand %vm848_vm3, %vm870_vm9 }
  0x3d   : > { %329 = vrot.lane.b32.xlu1 %v215_v1, %s697_s7  ;;  %350 = vrot.lane.b32.xlu0 %v215_v1, %s696_s6  ;;  %vm210_vm8 = vmand %vm852_vm4, %vm844_vm2  ;;  %s951_s6 = scalar_lea.hbm %s991_s3, %s542_s28  ;;  %s441_s7 = scalar_lea.sflag [#allocation5], %s823_s29 }
  0x3e   : > { %vm208_vm13 = vmand %vm852_vm4, %vm874_vm10 }
  0x41   : > { %314 = vrot.lane.b32.xlu1 %v215_v1, %s698_s8  ;;  %312 = vrot.lane.b32.xlu0 %v213_v0, %s698_s8  ;;  %s628_s8 = scalar_lea.vmem %s456_s5, 256 }
  0x42   : > { %p629_p11 = scmp.ne.s32.totalorder %s456_s5, %s628_s8 }
  0x44   : > { %p630_p13 = pnand %p629_p11, %p1018_p12 }
  0x45   : > { %234 = vrot.lane.b32.xlu1 %v215_v1, %s699_s10  ;;  %232 = vrot.lane.b32.xlu0 %v213_v0, %s699_s10  ;;  %s632_s10 = sshll.u32 %s704_s16, 4  ;;  %s633_s10 = int_to_ptr.vmem [resolvable:$false] %s632_s10 }
  0x46   : > { %p631_p1 = pneg %p630_p13  ;;  %p635_p3 = scmp.lt.s32.totalorder %s456_s5, %s633_s10 }
  0x49   : > { %270 = vrot.lane.b32.xlu1 %v215_v1, %s700_s23  ;;  %268 = vrot.lane.b32.xlu0 %v213_v0, %s700_s23  ;;  %s634_s23 = scalar_lea.vmem %s633_s10, 512 }
  0x4a   : > { %p636_p5 = scmp.lt.s32.totalorder %s634_s23, %s628_s8 }
  0x4c   : > { %p637_p8 = por %p636_p5, %p635_p3 }
  0x4d   : > { %219 = vrot.lane.b32.xlu1 %v215_v1, %s701_s11  ;;  %217 = vrot.lane.b32.xlu0 %v213_v0, %s701_s11 }
  0x4e   : > { %p638_p10 = pnand %p637_p8, %p631_p1 }
  0x51   : > { %255 = vrot.lane.b32.xlu1 %v215_v1, %s702_s17  ;;  %253 = vrot.lane.b32.xlu0 %v213_v0, %s702_s17 }
  0x55   : > { %381 = vperm.xlu0 %598, %v212_v3  }
  0xa7   : > { %v292_v10 = vpop.permute.xlu1 %291  ;;  %v349_v11 = vpop.permute.xlu0 %348 }
  0xab   : > { %v328_v16 = vpop.permute.xlu0 %327  ;;  %v294_v17 = vpop.permute.xlu1 %293 }
  0xac   : > { %v296_v19 = vsel %vm295_vm0, %v292_v10, %v294_v17  ;;  %v297_v20 = vsel %vm295_vm0, %v294_v17, %v292_v10  ;;  %vm905_vm0 = vcmp.ge.s32.totalorder %v192_v12, 1 }
  0xad   : > { %v302_v21 = vsel %vm840_vm1, %v296_v19, 0.0  ;;  %v303_v22 = vsel %vm844_vm2, %v297_v20, 0.0 }
  0xae   : > { %v306_v23 = vrot.slane %v302_v21, 4  ;;  %v307_v24 = vrot.slane %v303_v22, 4 }
  0xaf   : > { %v330_v26 = vpop.permute.xlu1 %329  ;;  %v351_v27 = vpop.permute.xlu0 %350 }
  0xb0   : > { %310 = vst [vmem:[#allocation2 + $0x48] sm:$0xf0] %v306_v23  ;;  %311 = vst [vmem:[#allocation2 + $0x28] sm:$0xf0] %v307_v24  ;;  %v332_v29 = vsel %vm331_vm5, %v328_v16, %v330_v26  ;;  %v333_v30 = vsel %vm331_vm5, %v330_v26, %v328_v16  ;;  %v353_v31 = vsel %vm352_vm7, %v349_v11, %v351_v27 }
  0xb1   : > { %v354_v32 = vsel %vm352_vm7, %v351_v27, %v349_v11  ;;  %v338_v33 = vsel %vm848_vm3, %v332_v29, 0.0  ;;  %v339_v34 = vsel %vm852_vm4, %v333_v30, 0.0  ;;  %v359_v35 = vsel %vm209_vm6, %v353_v31, 0.0  ;;  %vm199_vm5 = vmand %vm901_vm15, %vm870_vm9 }
  0xb2   : > { %v360_v36 = vsel %vm210_vm8, %v354_v32, 0.0  ;;  %v342_v37 = vrot.slane %v338_v33, 4  ;;  %v343_v38 = vrot.slane %v339_v34, 4  ;;  %361 = vst [vmem:[#allocation2 + $0x40] sm:$0xf] %v359_v35  ;;  %vm272_vm3 = vcmp.lt.s32.totalorder %v834_v5, 1  ;;  %vm200_vm7 = vmand %vm905_vm0, %vm874_vm10 }
  0xb3   : > { %362 = vst [vmem:[#allocation2 + $0x38] sm:$0xf] %v360_v36  ;;  %v315_v39 = vpop.permute.xlu1 %314  ;;  %v313_v40 = vpop.permute.xlu0 %312  ;;  %vm388_vm4 = vcmask 1041408   ;;  %vm221_vm6 = vcmp.lt.s32.totalorder %v834_v5, 17  ;;  %vm203_vm8 = vmand %vm901_vm15, %vm840_vm1  ;;  %vm384_vm1 = vcmask 293888  }
  0xb4   : > { %346 = vst [vmem:[#allocation2 + $0x8] sm:$0xf0] %v342_v37  ;;  %347 = vst [vmem:[#allocation2 + $0x20] sm:$0xf0] %v343_v38  ;;  %v317_v41 = vsel %vm316_vm11, %v313_v40, %v315_v39  ;;  %v318_v42 = vsel %vm316_vm11, %v315_v39, %v313_v40 }
  0xb5   : > { %v323_v43 = vsel %vm207_vm12, %v317_v41, 0.0  ;;  %v324_v44 = vsel %vm208_vm13, %v318_v42, 0.0  ;;  %vm204_vm11 = vmand %vm905_vm0, %vm844_vm2 }
  0xb6   : > { %325 = vst [vmem:[#allocation2 + $0x8] sm:$0xf] %v323_v43  ;;  %326 = vst [vmem:[#allocation2 + $0x20] sm:$0xf] %v324_v44 }
  0xb7   : > { %v235_v47 = vpop.permute.xlu1 %234  ;;  %v233_v48 = vpop.permute.xlu0 %232  ;;  %v368_v0 = vld [vmem:[#allocation2 + $0x28] sm:$0xff] }
  0xb8   : > { %v237_v49 = vsel %vm236_vm14, %v233_v48, %v235_v47  ;;  %v238_v50 = vsel %vm236_vm14, %v235_v47, %v233_v48  ;;  %v367_v4 = vld [vmem:[#allocation2 + $0x48] sm:$0xff] }
  0xb9   : > { %v243_v51 = vsel %vm901_vm15, %v238_v50, 0.0  ;;  %v244_v52 = vsel %vm905_vm0, %v237_v49, 0.0  ;;  %v371_v54 = vld [vmem:[#allocation2 + $0x40] sm:$0xf] }
  0xba   : > { %v372_v53 = vld [vmem:[#allocation2 + $0x38] sm:$0xf]  ;;  %v247_v55 = vrot.slane %v243_v51, 4  ;;  %v248_v56 = vrot.slane %v244_v52, 4  ;;  %v377_v58 = vpack.c.bf16 %v371_v54, %v371_v54 }
  0xbb   : > { %v378_v57 = vpack.c.bf16 %v372_v53, %v372_v53  ;;  %v271_v59 = vpop.permute.xlu1 %270  ;;  %v269_v60 = vpop.permute.xlu0 %268 }
  0xbc   : > { %251 = vst [vmem:[#allocation2 + $0x30] sm:$0xf0] %v247_v55  ;;  %252 = vst [vmem:[#allocation2] sm:$0xf0] %v248_v56  ;;  %v273_v61 = vsel %vm272_vm3, %v269_v60, %v271_v59  ;;  %v274_v62 = vsel %vm272_vm3, %v271_v59, %v269_v60  ;;  %v390_v63 = vsel %vm388_vm4, %v377_v58, 0 }
  0xbd   : > { %534 = vmatprep.subr.msk.bf16.mxu0 %vm388_vm4, %v378_v57  ;;  %v279_v1 = vsel %vm870_vm9, %v274_v62, 0.0  ;;  %v280_v2 = vsel %vm874_vm10, %v273_v61, 0.0  ;;  %v370_v3 = vld [vmem:[#allocation2 + $0x20] sm:$0xff]  ;;  %v369_v6 = vld [vmem:[#allocation2 + $0x8] sm:$0xff]  ;;  %vm257_vm10 = vcmp.lt.s32.totalorder %v834_v5, 15 }
  0xbe   : > { %406 = vmatpush1.bf16.msra.mxu0 %v390_v63  ;;  %v283_v7 = vrot.slane %v279_v1, 4  ;;  %v284_v8 = vrot.slane %v280_v2, 4  ;;  %v376_v9 = vpack.c.bf16 %v370_v3, %v368_v0  ;;  %v375_v10 = vpack.c.bf16 %v369_v6, %v367_v4 }
  0xbf   : > { %v220_v11 = vpop.permute.xlu1 %219  ;;  %v218_v12 = vpop.permute.xlu0 %217 }
  0xc0   : > { %287 = vst [vmem:[#allocation2 + $0x18] sm:$0xf0] %v283_v7  ;;  %288 = vst [vmem:[#allocation2 + $0x10] sm:$0xf0] %v284_v8  ;;  %v222_v15 = vsel %vm221_vm6, %v218_v12, %v220_v11  ;;  %v223_v16 = vsel %vm221_vm6, %v220_v11, %v218_v12  ;;  %407 = vmatprep.subr.bf16.mxu0 %v376_v9 }
  0xc1   : > { %v228_v17 = vsel %vm199_vm5, %v223_v16, 0.0  ;;  %v229_v18 = vsel %vm200_vm7, %v222_v15, 0.0 }
  0xc2   : > { %408 = vmatpush1.bf16.msra.mxu0 %v375_v10  ;;  %230 = vst [vmem:[#allocation2 + $0x30] sm:$0xf] %v228_v17  ;;  %231 = vst [vmem:[#allocation2] sm:$0xf] %v229_v18 }
  0xc3   : > { %v256_v19 = vpop.permute.xlu1 %255  ;;  %v254_v20 = vpop.permute.xlu0 %253 }
  0xc4   : > { %v258_v21 = vsel %vm257_vm10, %v254_v20, %v256_v19  ;;  %v259_v22 = vsel %vm257_vm10, %v256_v19, %v254_v20 }
  0xc5   : > { %v264_v23 = vsel %vm203_vm8, %v259_v22, 0.0  ;;  %v265_v24 = vsel %vm204_vm11, %v258_v21, 0.0 }
  0xc6   : > { %266 = vst [vmem:[#allocation2 + $0x18] sm:$0xf] %v264_v23  ;;  %267 = vst [vmem:[#allocation2 + $0x10] sm:$0xf] %v265_v24 }
  0xc9   : > { %v364_v13 = vld [vmem:[#allocation2] sm:$0xff]  ;;  %v363_v5 = vld [vmem:[#allocation2 + $0x30] sm:$0xff] }
  0xcd   : > { %v366_v25 = vld [vmem:[#allocation2 + $0x10] sm:$0xff]  ;;  %v365_v26 = vld [vmem:[#allocation2 + $0x18] sm:$0xff] }
  0xce   : > { %v374_v27 = vpack.c.bf16 %v366_v25, %v364_v13  ;;  %v373_v28 = vpack.c.bf16 %v365_v26, %v363_v5 }
  0xd0   : > { %409 = vmatprep.subr.bf16.mxu0 %v374_v27  ;;  %v382_v29 = vpop.permute.xlu0 %381 }
  0xd1   : > { %410 = vmatpush1.bf16.msra.mxu0 %v373_v28 }
  0xd4   : > { %535 = vmatmul.mubr.msk.bf16.vlgmr.msra.gmra.mxu0 %vm384_vm1, %v211_v14 }
 0x194   : > { %v429_v30 = vpop.f32.mrf.mxu0 }
 0x195   : > { %v430_v31 = vadd.f32 %v429_v30, %v382_v29 }
 0x196   : > { %v431_v32 = vpop.f32.mrf.mxu0 }
 0x197   : > { %v436_v33 = vmax.f32 %v430_v31, 0.0  ;;  %v432_v34 = vadd.f32 %v431_v32, %v382_v29 }
 0x198   : > { %v433_v35 = vpop.f32.mrf.mxu0 }
 0x199   : > { %438 = vst [vmem:[%s186_s30] sm:$0xff] %v436_v33  ;;  %v437_v36 = vmax.f32 %v432_v34, 0.0 }
 0x19a   : > { %v434_v37 = vpop.f32.mrf.mxu0 }
 0x19b   : > { %439 = vst [vmem:[%s186_s30 + $0x8] sm:$0xff] %v437_v36 }
 0x19c   : > { %641 = shalt.err (!%p638_p10)
}
 0x19d   : > { %s642_s11 = scalar_lea.hbm %s951_s6, 256  ;;  %s646_s19 = scalar_lea.hbm %s991_s3, 512 }
 0x19e   : > { %p643_p2 = scmp.ne.s32.totalorder %s951_s6, %s642_s11  ;;  %p647_p7 = scmp.lt.s32.totalorder %s951_s6, %s991_s3 }
 0x19f   : > { %p648_p0 = scmp.lt.s32.totalorder %s646_s19, %s642_s11 }
 0x1a0   : > { %p644_p4 = pnand %p643_p2, %p1018_p12 }
 0x1a1   : > { %p649_p6 = por %p648_p0, %p647_p7 }
 0x1a2   : > { %p645_p9 = pneg %p644_p4 }
 0x1a4   : > { %p650_p11 = pnand %p649_p6, %p645_p9 }
 0x1a6   : > { %653 = shalt.err (!%p650_p11)
}
 0x1a7   : > { %545 = dma.vmem_to_hbm [thread:$0]  (%p1018_p12), %s456_s5, 256, %s951_s6, %s441_s7  }
 0x1a8 PF: > { %s467_s26 = sand.u32 1, %s680_s12   ;;  %p1019_p13 = scmp.ne.s32.totalorder %s997_s25, 0 }
 0x1a9   : > { %p1020_p1 = scmp.ge.s32.totalorder %s692_s15, 2  ;;  %s468_s27 = scalar_lea.sflag [#allocation5], %s467_s26 }
 0x1ab   : > { %p552_p3 = pnand %p1020_p1, %p1019_p13 }
 0x1ad   : > { %p553_p5 = pneg %p552_p3 }
 0x1af   : > { %675 = dma.done.wait (%p553_p5), %s468_s27, 256  }
 0x1b0   : > { %677 = vsyncadd (%p553_p5), %s468_s27, 4294967040  ;;  %p16_p8 = scmp.ge.s32.totalorder %s750_s18, 4   ;;  %s1021_s12 = smov %s684_s13 }
 0x1b1   : > { %s1022_s13 = smov %s688_s14  ;;  %s1023_s14 = smov %s762_s21 }
 0x1b2   : > { %s1024_s15 = smov %s750_s18  ;;  %18 = sbr.rel (!%p16_p8) target bundleno = 5 (0x5), region = 77 }
 0x1b7   :  { %473 = vsyncpa [#allocation4], 1 }
 0x1b8   :  { %475 = vsyncpa [#allocation4 + $0x1], 1 }
 0x1b9   :  { %476 = vsyncpa [#allocation5], 1 }
 0x1ba   :  { %478 = vsyncpa [#allocation5 + $0x1], 1 }

</bundles_post_ra>
